<compile_context>
chip_gen: v7x
topology: tpu7x:2x2x1
jax: 0.10.0
libtpu: 0.0.40
codegen_flags: <defaults>
</compile_context>

<pallas_src>
import functools

import jax
import jax.numpy as jnp
from jax.experimental import pallas as pl
from jax.experimental.pallas import tpu as pltpu


def _cdiv(a, b):
    return (a + b - 1) // b


def _round_up(a, b):
    return _cdiv(a, b) * b


def _classify_kernel(x_ref, w_ref, o_ref, part_ref, acc_ref, *,
                     hw, c1, hw_tile, c1_tile, inv_hw,
                     needs_hw_mask, needs_c_mask):
    """Fused global-average-pool + 1x1 conv (one (n, c1, hw) grid step).

    x_ref:    (n_tile, c1_tile, hw_tile)  activation block (lane dim = spatial)
    w_ref:    (c1_tile, C2)               1x1-conv weight slice (transposed)
    o_ref:    (n_tile, C2)                flattened output block
    part_ref: (n_tile, c1_tile, 128) f32  lane-parallel spatial partial sums
    acc_ref:  (n_tile, C2) f32            running channel-reduction accumulator
    """
    ic = pl.program_id(1)          # channel (conv K-reduction) block
    ih = pl.program_id(2)          # spatial block
    n_c = pl.num_programs(1)
    n_h = pl.num_programs(2)

    @pl.when(jnp.logical_and(ic == 0, ih == 0))
    def _init_acc():
        acc_ref[...] = jnp.zeros_like(acc_ref)

    @pl.when(ih == 0)
    def _init_part():
        part_ref[...] = jnp.zeros_like(part_ref)

    x = x_ref[...].astype(jnp.float32)
    if needs_hw_mask:
        # Ragged spatial tail: out-of-bounds lanes contain garbage -> zero them.
        rem = hw - ih * hw_tile
        lane = jax.lax.broadcasted_iota(jnp.int32, x.shape, 2)
        x = jnp.where(lane < rem, x, 0.0)

    # Hot loop: pure VPU folding of aligned 128-lane slices; no per-step
    # cross-lane (XLU) reduce.
    part = part_ref[...]
    for j in range(hw_tile // 128):
        part = part + x[:, :, j * 128:(j + 1) * 128]
    part_ref[...] = part

    @pl.when(ih == n_h - 1)
    def _fold_channel_block():
        # One cross-lane reduce per channel block, then the MXU matmul.
        s = jnp.sum(part_ref[...], axis=-1)            # (n_tile, c1_tile)
        w = w_ref[...].astype(jnp.float32)             # (c1_tile, C2)
        if needs_c_mask:
            c_rem = c1 - ic * c1_tile
            ch = jax.lax.broadcasted_iota(jnp.int32, s.shape, 1)
            s = jnp.where(ch < c_rem, s, 0.0)
            wr = jax.lax.broadcasted_iota(jnp.int32, w.shape, 0)
            w = jnp.where(wr < c_rem, w, 0.0)
        acc_ref[...] += jnp.dot(s, w, preferred_element_type=jnp.float32)

    @pl.when(jnp.logical_and(ic == n_c - 1, ih == n_h - 1))
    def _finalize():
        o_ref[...] = (acc_ref[...] * inv_hw).astype(o_ref.dtype)


def _pool_conv_single(x, conv_w, *, tile_hw=2048):
    """AdaptiveAvgPool2d(1) + 1x1 conv (bias=False) + flatten for one tensor.

    x:      (N, C1, H, W)
    conv_w: (C2, C1, 1, 1)
    returns (N, C2)
    """
    N, C1, H, W = x.shape
    C2 = conv_w.shape[0]
    HW = H * W
    itemsize = jnp.dtype(x.dtype).itemsize

    # Lane-dense view: spatial axis last (reshape is a view; no extra HBM pass).
    x_flat = x.reshape(N, C1, HW)
    # Weight as (C1, C2) so the per-block matmul is pooled @ w.
    w_mat = conv_w.reshape(C2, C1).T

    # --- batch tiling ("parallel" axis: lets v7x use both TensorCores) ---
    n_tile = N // 2 if (N >= 16 and N % 16 == 0) else N
    n_blocks = N // n_tile

    # --- spatial tiling: lane-dense multiple of 128; ragged tail masked ---
    hw_cap = max(128, (int(tile_hw) // 128) * 128)
    hw_tile = min(_round_up(HW, 128), hw_cap)
    n_hw = _cdiv(HW, hw_tile)
    needs_hw_mask = (HW % hw_tile) != 0

    # --- channel tiling: conv K-reduction axis.  Budget the x block at
    #     ~4 MiB per buffer (double-buffered by Pallas) so the weight also
    #     streams in small slices and everything fits v7x's VMEM. ---
    x_block_budget = 4 * 1024 * 1024
    if C1 % 8 != 0:
        c1_tile = C1                                   # full dim (always legal)
    else:
        per_c_bytes = max(1, n_tile * hw_tile * itemsize)
        c1_tile = min(C1, max(8, (x_block_budget // per_c_bytes) // 8 * 8))
    n_c1 = _cdiv(C1, c1_tile)
    needs_c_mask = (C1 % c1_tile) != 0

    kernel = functools.partial(
        _classify_kernel,
        hw=HW, c1=C1, hw_tile=hw_tile, c1_tile=c1_tile,
        inv_hw=1.0 / float(HW),
        needs_hw_mask=needs_hw_mask, needs_c_mask=needs_c_mask)

    return pl.pallas_call(
        kernel,
        out_shape=jax.ShapeDtypeStruct((N, C2), x.dtype),
        grid_spec=pltpu.PrefetchScalarGridSpec(
            num_scalar_prefetch=0,
            grid=(n_blocks, n_c1, n_hw),
            in_specs=[
                pl.BlockSpec((n_tile, c1_tile, hw_tile),
                             lambda n, c, h: (n, c, h)),
                pl.BlockSpec((c1_tile, C2),
                             lambda n, c, h: (c, 0)),
            ],
            out_specs=pl.BlockSpec((n_tile, C2), lambda n, c, h: (n, 0)),
            scratch_shapes=[
                pltpu.VMEM((n_tile, c1_tile, 128), jnp.float32),  # lane partial
                pltpu.VMEM((n_tile, C2), jnp.float32),            # accumulator
            ],
        ),
        compiler_params=pltpu.CompilerParams(
            dimension_semantics=("parallel", "arbitrary", "arbitrary"),
            vmem_limit_bytes=48 * 1024 * 1024,
        ),
    )(x_flat, w_mat)


def classify_forward(x, conv_w, *, tile_hw=2048):
    """Classify.forward (k=1, s=1, g=1, bias=False).

    x:      (N, C1, H, W) tensor, or a list of tensors (channels concatenated
            after pooling, as in the PyTorch module)
    conv_w: (C2, C1_total, 1, 1)
    returns (N, C2)   (the Flatten of the (N, C2, 1, 1) conv output)
    """
    xs = x if isinstance(x, (list, tuple)) else [x]
    out = None
    off = 0
    for xi in xs:
        ci = xi.shape[1]
        w_i = conv_w[:, off:off + ci]               # (C2, ci, 1, 1)
        y_i = _pool_conv_single(xi, w_i, tile_hw=tile_hw)
        out = y_i if out is None else out + y_i     # cat(pool)+conv == sum of partials
        off += ci
    return out


def _reference(x, conv_w):
    xs = x if isinstance(x, (list, tuple)) else [x]
    z = jnp.concatenate([xi.mean(axis=(2, 3)) for xi in xs], axis=1)   # (N, C_total)
    return z @ conv_w[:, :, 0, 0].T                                    # (N, C2)


if __name__ == "__main__":
    key = jax.random.PRNGKey(0)
    k_x, k_x2, k_w = jax.random.split(key, 3)

    N, C1, H, W = 2, 4, 16, 16
    C2 = 8

    x = jax.random.normal(k_x, (N, C1, H, W), dtype=jnp.float32)
    conv_w = jax.random.normal(k_w, (C2, C1, 1, 1), dtype=jnp.float32) * 0.1

    # Single-tensor path (the common case; HW = 256 is an exact lane multiple).
    out = classify_forward(x, conv_w)
    out = jax.block_until_ready(out)
    ref = _reference(x, conv_w)
    assert out.shape == (N, C2)
    assert jnp.allclose(out, ref, atol=1e-4, rtol=1e-4)

    # List-input path (torch.cat of pooled features along channels).
    # The second tensor has HW = 64 < 128, exercising the in-kernel ragged mask.
    x2 = jax.random.normal(k_x2, (N, C1, H // 2, W // 2), dtype=jnp.float32)
    conv_w_list = jax.random.normal(k_w, (C2, 2 * C1, 1, 1), dtype=jnp.float32) * 0.1
    out_l = classify_forward([x, x2], conv_w_list)
    out_l = jax.block_until_ready(out_l)
    ref_l = _reference([x, x2], conv_w_list)
    assert out_l.shape == (N, C2)
    assert jnp.allclose(out_l, ref_l, atol=1e-4, rtol=1e-4)

    print("KERNEL_OK")
</pallas_src>

<mosaic_0001>
module attributes {stable_mosaic.version = 11 : i64} {
  func.func @_classify_kernel(%arg0: i32, %arg1: i32, %arg2: i32, %arg3: memref<2x4x256xf32, #tpu.memory_space<vmem>>, %arg4: memref<4x8xf32, #tpu.memory_space<vmem>>, %arg5: memref<2x8xf32, #tpu.memory_space<vmem>>, %arg6: memref<2x4x128xf32, #tpu.memory_space<vmem>>, %arg7: memref<2x8xf32, #tpu.memory_space<vmem>>) attributes {dimension_semantics = [#tpu.dimension_semantics<parallel>, #tpu.dimension_semantics<arbitrary>, #tpu.dimension_semantics<arbitrary>], iteration_bounds = array<i64: 1, 1, 1>, scalar_prefetch = 0 : i64, scratch_operands = 2 : i64, tpu.core_type = #tpu.core_type<tc>, window_params = [{transform_indices = @transform_0, window_bounds = array<i64: 2, 4, 256>}, {transform_indices = @transform_1, window_bounds = array<i64: 4, 8>}, {transform_indices = @transform_2, window_bounds = array<i64: 2, 8>}]} {
    %c0_i32 = arith.constant 0 : i32
    %0 = arith.cmpi eq, %arg1, %c0_i32 : i32
    %c0_i32_0 = arith.constant 0 : i32
    %1 = arith.cmpi eq, %arg2, %c0_i32_0 : i32
    %2 = arith.andi %0, %1 : i1
    %3 = arith.extui %2 : i1 to i32
    %c0_i32_1 = arith.constant 0 : i32
    %4 = arith.cmpi ne, %3, %c0_i32_1 : i32
    scf.if %4 {
      %cst = arith.constant 0.000000e+00 : f32
      %23 = vector.broadcast %cst : f32 to vector<2x8xf32>
      %c0_17 = arith.constant 0 : index
      %c0_18 = arith.constant 0 : index
      %24 = vector.load %arg7[%c0_17, %c0_18] : memref<2x8xf32, #tpu.memory_space<vmem>>, vector<2x8xf32>
      tpu.vector_store %arg7[%c0_17, %c0_18], %23 {strides = array<i32>} : memref<2x8xf32, #tpu.memory_space<vmem>>, vector<2x8xf32>,
    } else {
    }
    %c0_i32_2 = arith.constant 0 : i32
    %5 = arith.cmpi eq, %arg2, %c0_i32_2 : i32
    %6 = arith.extui %5 : i1 to i32
    %c0_i32_3 = arith.constant 0 : i32
    %7 = arith.cmpi ne, %6, %c0_i32_3 : i32
    scf.if %7 {
      %cst = arith.constant 0.000000e+00 : f32
      %23 = vector.broadcast %cst : f32 to vector<2x4x128xf32>
      %c0_17 = arith.constant 0 : index
      %c0_18 = arith.constant 0 : index
      %c0_19 = arith.constant 0 : index
      %24 = vector.load %arg6[%c0_17, %c0_18, %c0_19] : memref<2x4x128xf32, #tpu.memory_space<vmem>>, vector<2x4x128xf32>
      tpu.vector_store %arg6[%c0_17, %c0_18, %c0_19], %23 {strides = array<i32>} : memref<2x4x128xf32, #tpu.memory_space<vmem>>, vector<2x4x128xf32>,
    } else {
    }
    %c0 = arith.constant 0 : index
    %c0_4 = arith.constant 0 : index
    %c0_5 = arith.constant 0 : index
    %8 = vector.load %arg3[%c0, %c0_4, %c0_5] : memref<2x4x256xf32, #tpu.memory_space<vmem>>, vector<2x4x256xf32>
    %c0_6 = arith.constant 0 : index
    %c0_7 = arith.constant 0 : index
    %c0_8 = arith.constant 0 : index
    %9 = vector.load %arg6[%c0_6, %c0_7, %c0_8] : memref<2x4x128xf32, #tpu.memory_space<vmem>>, vector<2x4x128xf32>
    %10 = vector.extract_strided_slice %8 {offsets = [0, 0, 0], sizes = [2, 4, 128], strides = [1, 1, 1]} : vector<2x4x256xf32> to vector<2x4x128xf32>
    %11 = arith.addf %9, %10 : vector<2x4x128xf32>
    %12 = vector.extract_strided_slice %8 {offsets = [0, 0, 128], sizes = [2, 4, 128], strides = [1, 1, 1]} : vector<2x4x256xf32> to vector<2x4x128xf32>
    %13 = arith.addf %11, %12 : vector<2x4x128xf32>
    %c0_9 = arith.constant 0 : index
    %c0_10 = arith.constant 0 : index
    %c0_11 = arith.constant 0 : index
    %14 = vector.load %arg6[%c0_9, %c0_10, %c0_11] : memref<2x4x128xf32, #tpu.memory_space<vmem>>, vector<2x4x128xf32>
    tpu.vector_store %arg6[%c0_9, %c0_10, %c0_11], %13 {strides = array<i32>} : memref<2x4x128xf32, #tpu.memory_space<vmem>>, vector<2x4x128xf32>,
    %c0_i32_12 = arith.constant 0 : i32
    %15 = arith.cmpi eq, %arg2, %c0_i32_12 : i32
    %16 = arith.extui %15 : i1 to i32
    %c0_i32_13 = arith.constant 0 : i32
    %17 = arith.cmpi ne, %16, %c0_i32_13 : i32
    scf.if %17 {
      %c0_17 = arith.constant 0 : index
      %c0_18 = arith.constant 0 : index
      %c0_19 = arith.constant 0 : index
      %23 = vector.load %arg6[%c0_17, %c0_18, %c0_19] : memref<2x4x128xf32, #tpu.memory_space<vmem>>, vector<2x4x128xf32>
      %cst = arith.constant dense<0.000000e+00> : vector<2x4xf32>
      %24 = vector.multi_reduction <add>, %23, %cst [2] : vector<2x4x128xf32> to vector<2x4xf32>
      %c0_20 = arith.constant 0 : index
      %c0_21 = arith.constant 0 : index
      %25 = vector.load %arg4[%c0_20, %c0_21] : memref<4x8xf32, #tpu.memory_space<vmem>>, vector<4x8xf32>
      %c0_22 = arith.constant 0 : index
      %c0_23 = arith.constant 0 : index
      %26 = vector.load %arg7[%c0_22, %c0_23] : memref<2x8xf32, #tpu.memory_space<vmem>>, vector<2x8xf32>
      %cst_24 = arith.constant dense<0.000000e+00> : vector<2x8xf32>
      %27 = tpu.matmul %24, %25, %cst_24 {dimension_numbers = #tpu.dot_dimension_numbers<[1], [0], [0], [1], [0, 0, 1, 1], [], []>} : vector<2x4xf32>, vector<4x8xf32>, vector<2x8xf32> -> vector<2x8xf32>
      %28 = arith.addf %26, %27 : vector<2x8xf32>
      %c0_25 = arith.constant 0 : index
      %c0_26 = arith.constant 0 : index
      %29 = vector.load %arg7[%c0_25, %c0_26] : memref<2x8xf32, #tpu.memory_space<vmem>>, vector<2x8xf32>
      tpu.vector_store %arg7[%c0_25, %c0_26], %28 {strides = array<i32>} : memref<2x8xf32, #tpu.memory_space<vmem>>, vector<2x8xf32>,
    } else {
    }
    %c0_i32_14 = arith.constant 0 : i32
    %18 = arith.cmpi eq, %arg1, %c0_i32_14 : i32
    %c0_i32_15 = arith.constant 0 : i32
    %19 = arith.cmpi eq, %arg2, %c0_i32_15 : i32
    %20 = arith.andi %18, %19 : i1
    %21 = arith.extui %20 : i1 to i32
    %c0_i32_16 = arith.constant 0 : i32
    %22 = arith.cmpi ne, %21, %c0_i32_16 : i32
    scf.if %22 {
      %c0_17 = arith.constant 0 : index
      %c0_18 = arith.constant 0 : index
      %23 = vector.load %arg7[%c0_17, %c0_18] : memref<2x8xf32, #tpu.memory_space<vmem>>, vector<2x8xf32>
      %cst = arith.constant 3.906250e-03 : f32
      %24 = vector.broadcast %cst : f32 to vector<2x8xf32>
      %25 = arith.mulf %23, %24 : vector<2x8xf32>
      %c0_19 = arith.constant 0 : index
      %c0_20 = arith.constant 0 : index
      %26 = vector.load %arg5[%c0_19, %c0_20] : memref<2x8xf32, #tpu.memory_space<vmem>>, vector<2x8xf32>
      tpu.vector_store %arg5[%c0_19, %c0_20], %25 {strides = array<i32>} : memref<2x8xf32, #tpu.memory_space<vmem>>, vector<2x8xf32>,
    } else {
    }
    return
  }
  func.func @transform_0(%arg0: i32, %arg1: i32, %arg2: i32) -> (i32, i32, i32) {
    %c0_i32 = arith.constant 0 : i32
    return %arg0, %arg1, %arg2 : i32, i32, i32
  }
  func.func @transform_1(%arg0: i32, %arg1: i32, %arg2: i32) -> (i32, i32) {
    %c0_i32 = arith.constant 0 : i32
    %c0_i32_0 = arith.constant 0 : i32
    return %arg1, %c0_i32 : i32, i32
  }
  func.func @transform_2(%arg0: i32, %arg1: i32, %arg2: i32) -> (i32, i32) {
    %c0_i32 = arith.constant 0 : i32
    %c0_i32_0 = arith.constant 0 : i32
    return %arg0, %c0_i32 : i32, i32
  }
}

</mosaic_0001>

<bundles_post_ra>
// kernel: tpu_custom_call.1
= control target key start
LH: loop header
LB: loop body
LE: loop exit
PB: predicated region body
PF: predicated region fallthrough
CT: control target
= control target key end

     0   :  { %7 = vsyncpa [#allocation5], 0  ;;  %s347_s0 = inlined_call_operand.hbm [shape: f32[2,4,256], index: 0, kind: input, shape index: {}]   ;;  %s348_s1 = inlined_call_operand.hbm [shape: f32[4,8], index: 1, kind: input, shape index: {}]   ;;  %s349_s2 = inlined_call_operand.hbm [shape: f32[2,8], index: 2, kind: output, shape index: {}]  }
   0x1   :  { %8 = vsyncpa [#allocation8], 0 }
   0x2   :  { %9 = vsyncpa [#allocation6], 0  ;;  %s286_s9 = smov [#allocation4]   ;;  %s214_s13 = scalar_lea.hbm %s347_s0, 256 }
   0x3   :  { %s15_s10 = sshll.u32 %s286_s9, 4  ;;  %p215_p0 = scmp.ne.s32.totalorder %s347_s0, %s214_s13  ;;  %s16_s10 = int_to_ptr.vmem [resolvable:$true] %s15_s10 }
   0x4   :  { %p218_p1 = scmp.lt.u32.totalorder %s214_s13, %s347_s0 }
   0x6   :  { %p220_p2 = pnand %p218_p1, %p215_p0 }
   0x8   :  { %223 = shalt.err (!%p220_p2)
}
   0x9   :  { %s224_s18 = scalar_lea.vmem %s16_s10, 256  ;;  %p229_p4 = scmp.lt.s32.totalorder %s16_s10, %s16_s10 }
   0xa   :  { %p225_p3 = scmp.ne.s32.totalorder %s16_s10, %s224_s18  ;;  %p230_p5 = scmp.lt.s32.totalorder %s224_s18, %s224_s18 }
   0xc   :  { %p231_p6 = por %p230_p5, %p229_p4 }
   0xe   :  { %p232_p7 = pnand %p231_p6, %p225_p3 }
  0x10   :  { %235 = shalt.err (!%p232_p7)
}
  0x11   :  { %s287_s19 = smov 128   ;;  %s288_s20 = smov 8  }
  0x12   :  { %21 = dma.hbm_to_vmem [thread:$0]  %s347_s0, 256, %s16_s10, [#allocation5], %s287_s19, %s287_s19, %s288_s20  }
  0x13   :  { %s289_s23 = smov [#allocation7]   ;;  %s236_s27 = scalar_lea.hbm %s348_s1, 64 }
  0x14   :  { %s28_s24 = sshll.u32 %s289_s23, 4  ;;  %p237_p8 = scmp.ne.s32.totalorder %s348_s1, %s236_s27  ;;  %s29_s24 = int_to_ptr.vmem [resolvable:$true] %s28_s24 }
  0x15   :  { %p240_p9 = scmp.lt.u32.totalorder %s236_s27, %s348_s1 }
  0x17   :  { %p242_p10 = pnand %p240_p9, %p237_p8 }
  0x19   :  { %245 = shalt.err (!%p242_p10)
}
  0x1a   :  { %s246_s4 = scalar_lea.vmem %s29_s24, 64  ;;  %p251_p12 = scmp.lt.s32.totalorder %s29_s24, %s29_s24 }
  0x1b   :  { %p247_p11 = scmp.ne.s32.totalorder %s29_s24, %s246_s4  ;;  %p252_p13 = scmp.lt.s32.totalorder %s246_s4, %s246_s4 }
  0x1d   :  { %p253_p0 = por %p252_p13, %p251_p12 }
  0x1f   :  { %p254_p1 = pnand %p253_p0, %p247_p11 }
  0x21   :  { %257 = shalt.err (!%p254_p1)
}
  0x22   :  { %31 = dma.hbm_to_vmem [thread:$0]  %s348_s1, 64, %s29_s24, [#allocation8]  }
  0x23   :  { %280 = dma.done.wait [#allocation5], 256  }
  0x24   :  { %281 = vsyncadd [#allocation5], 4294967040 }
  0x25   :  { %282 = dma.done.wait [#allocation8], 64  }
  0x26   :  { %283 = vsyncadd [#allocation8], 4294967232  ;;  %v290_v0 = vmov 0.0   ;;  %v51_v1 = vld [vmem:[#allocation4] sm:$0xff]  ;;  %v52_v2 = vld [vmem:[#allocation4 + $0x8] sm:$0xff]  ;;  %vm72_vm0 = vcmask 1043456   ;;  %v83_v16 = vlaneseq }
  0x27   :  { %49 = vst [vmem:[#allocation2] sm:$0xf] %v290_v0  ;;  %50 = vst [vmem:[#allocation2 + $0x4] sm:$0xf] %v290_v0  ;;  %200 = vmatprep.subr.mxu0 %v290_v0  ;;  %v59_v4 = vcombine.high %v51_v1, %v51_v1  ;;  %v60_v6 = vcombine.high %v52_v2, %v52_v2  ;;  %v79_v15 = vld [vmem:[#allocation7] sm:$0xf] }
  0x28   :  { %201 = vmatpush3.msk.msra.mxu0 %vm72_vm0, %v79_v15  ;;  %vm291_vm1 = vmmov 0   ;;  %vm44_vm2 = vcmask 58368   ;;  %v84_v17 = vand.u32 127, %v83_v16  ;;  %v86_v18 = vshrl.u32 %v83_v16, 7  ;;  %s292_s1 = smov [#allocation9]  }
  0x29   :  { %202 = vmatprep.mubr.msk.f32.mxu0 %vm291_vm1, %v290_v0  ;;  %45 = vst.msk [vmem:[#allocation3] sm:$0x3] %vm44_vm2, %v290_v0  ;;  %vm93_vm3 = vcmask 1041409   ;;  %vm95_vm4 = vcmask 31744   ;;  %s186_s6 = sshll.u32 %s292_s1, 4  ;;  %s187_s6 = int_to_ptr.vmem [resolvable:$true] %s186_s6 }
  0x2a   :  { %v87_v20 = vsub.s32 %v84_v17, %v86_v18  ;;  %s258_s7 = scalar_lea.vmem %s187_s6, 32  ;;  %p263_p3 = scmp.lt.s32.totalorder %s187_s6, %s187_s6 }
  0x2b   :  { %p259_p2 = scmp.ne.s32.totalorder %s187_s6, %s258_s7  ;;  %p264_p4 = scmp.lt.s32.totalorder %s258_s7, %s258_s7 }
  0x2d   :  { %p265_p5 = por %p264_p4, %p263_p3 }
  0x2e   :  { %v53_v3 = vld [vmem:[#allocation2] sm:$0xf]  ;;  %v54_v5 = vld [vmem:[#allocation2 + $0x4] sm:$0xf] }
  0x2f   :  { %v55_v7 = vadd.f32 %v53_v3, %v51_v1  ;;  %v56_v8 = vadd.f32 %v54_v5, %v52_v2  ;;  %p266_p6 = pnand %p265_p5, %p259_p2 }
  0x30   :  { %v80_v25 = vld [vmem:[#allocation3] sm:$0x3] }
  0x31   :  { %v63_v9 = vadd.f32 %v59_v4, %v55_v7  ;;  %v64_v10 = vadd.f32 %v60_v6, %v56_v8 }
  0x33   :  { %65 = vst [vmem:[#allocation2] sm:$0xf] %v63_v9  ;;  %66 = vst [vmem:[#allocation2 + $0x4] sm:$0xf] %v64_v10 }
  0x3a   :  { %v70_v11 = vld [vmem:[#allocation2] sm:$0xf]  ;;  %v71_v12 = vld [vmem:[#allocation2 + $0x4] sm:$0xf] }
  0x3b   :  { %v73_v13 = vsel %vm72_vm0, %v70_v11, 0.0  ;;  %v76_v14 = vsel %vm72_vm0, %v71_v12, 0.0 }
  0x3c   :  { %74 = vadd.xlane.f32.xlu0 %v73_v13 }
  0x40   :  { %77 = vadd.xlane.f32.xlu0 %v76_v14 }
  0xc9   :  { %v75_v19 = vpop.xlane.xlu0 %74 }
  0xca   :  { %v88_v22 = vrot.slane %v75_v19, %v87_v20 }
  0xcd   :  { %v78_v21 = vpop.xlane.xlu0 %77 }
  0xce   :  { %v92_v23 = vrot.slane %v78_v21, %v87_v20 }
  0xd0   :  { %v94_v24 = vsel %vm93_vm3, %v92_v23, %v88_v22 }
  0xd1   :  { %203 = vmatmul.mubr.msk.f32.vlgmr.msra.gmra.mrb[0].mxu0 %vm95_vm4, %v94_v24 }
 0x1a4   :  { %v167_v26 = vpop.f32.mrb[0].mxu0 }
 0x1a5   :  { %v171_v27 = vadd.f32 %v167_v26, %v80_v25  ;;  %v204_v28 = vpop.f32.mrb[1].mxu0 }
 0x1a7   :  { %173 = vst.msk [vmem:[#allocation3] sm:$0x3] %vm44_vm2, %v171_v27 }
 0x1ae   :  { %v176_v29 = vld [vmem:[#allocation3] sm:$0x3] }
 0x1af   :  { %v177_v30 = vmul.f32 0.00390625, %v176_v29 }
 0x1b1   :  { %179 = vst.msk [vmem:[#allocation9] sm:$0x3] %vm44_vm2, %v177_v30 }
 0x1b2   :  { %269 = shalt.err (!%p266_p6)
}
 0x1b3   :  { %s270_s10 = scalar_lea.hbm %s349_s2, 32 }
 0x1b4   :  { %p271_p7 = scmp.ne.s32.totalorder %s349_s2, %s270_s10  ;;  %p274_p8 = scmp.lt.u32.totalorder %s270_s10, %s349_s2 }
 0x1b6   :  { %p276_p9 = pnand %p274_p8, %p271_p7 }
 0x1b8   :  { %279 = shalt.err (!%p276_p9)
}
 0x1b9   :  { %189 = dma.vmem_to_hbm [thread:$0]  %s187_s6, 32, %s349_s2, [#allocation6]  }
 0x1ba   :  { %284 = dma.done.wait [#allocation6], 32  }
 0x1bb   :  { %285 = vsyncadd [#allocation6], 4294967264 }
 0x1bc   :  { %193 = vsyncpa [#allocation5], 1 }
 0x1bd   :  { %194 = vsyncpa [#allocation8], 1 }
 0x1be   :  { %195 = vsyncpa [#allocation6], 1 }

</bundles_post_ra>
